<compile_context>
chip_gen: v6e
topology: v6e:2x2x1
jax: 0.10.0
libtpu: 0.0.40
codegen_flags: <defaults>
</compile_context>

<pallas_src>
import jax
import jax.numpy as jnp
from jax.experimental import pallas as pl
from jax.experimental.pallas import tpu as pltpu

# Synthetic environment constants (CartPole-like): obs dim 4, 2 actions.
NUM_STATES = 4
NUM_ACTIONS = 2
HID1 = 128
HID2 = 30

OUT_LANES = 8                 # padded output width (>= NUM_ACTIONS), 32-B rows
MIN_GRID_STEPS = 2            # keep >=2 grid points so both v7x TCs get work

# ---- packed-parameter layout (all row offsets 8-sublane aligned) -----------
P_LANES = 128                 # lane width; conveniently equals HID1
R_W1 = 0                      # rows [0,   4):   w1  [NUM_STATES, 128]
R_B1 = 8                      # row   8:         b1  [1, 128]
R_W2 = 16                     # rows [16, 144):  w2  [128, 128] (cols >= HID2 zero)
R_B2 = R_W2 + HID1            # row 144:         b2  [1, 128]   (lanes >= HID2 zero)
R_W3 = R_B2 + 8               # rows [152, 280): w3  [128, 128] (rows >= HID2, cols >= A zero)
R_B3 = R_W3 + HID1            # row 280:         b3  [1, 128]   (lanes >= A zero)
P_ROWS = R_B3 + 8             # 288 rows total  -> 288*128*4 B = 144 KiB of VMEM


def _cdiv(a, b):
    return -(-a // b)


def _round_up(x, m):
    return ((x + m - 1) // m) * m


def pack_params(params):
    """Pack (w1,b1,w2,b2,w3,b3) into one lane-dense f32[P_ROWS, 128] buffer.
    Do this once; reuse the packed buffer across forward calls (weights stay
    device-resident, one DMA per kernel call instead of six)."""
    w1, b1, w2, b2, w3, b3 = params
    P = jnp.zeros((P_ROWS, P_LANES), jnp.float32)
    P = P.at[R_W1:R_W1 + NUM_STATES, :HID1].set(w1)
    P = P.at[R_B1, :HID1].set(b1.reshape(-1))
    P = P.at[R_W2:R_W2 + HID1, :HID2].set(w2)
    P = P.at[R_B2, :HID2].set(b2.reshape(-1))
    P = P.at[R_W3:R_W3 + HID2, :NUM_ACTIONS].set(w3)
    P = P.at[R_B3, :NUM_ACTIONS].set(b3.reshape(-1))
    return P


def net_kernel(x_ref, p_ref, o_ref):
    x = x_ref[...]                                  # [TM, NUM_STATES]

    w1 = p_ref[R_W1:R_W1 + NUM_STATES, :]           # [4, 128]
    b1 = p_ref[R_B1:R_B1 + 1, :]                    # [1, 128]
    w2 = p_ref[R_W2:R_W2 + HID1, :]                 # [128, 128] (zero-padded cols)
    b2 = p_ref[R_B2:R_B2 + 1, :]                    # [1, 128]
    w3 = p_ref[R_W3:R_W3 + HID1, :]                 # [128, 128] (zero-padded rows/cols)
    b3 = p_ref[R_B3:R_B3 + 1, :]                    # [1, 128]

    # fc1 + relu on the VPU: K=4 contraction as 4 broadcast FMAs
    # (avoids a near-empty MXU push/pop round trip and keeps the input narrow).
    h1 = b1
    for k in range(NUM_STATES):
        h1 = h1 + x[:, k:k + 1] * w1[k:k + 1, :]
    h1 = jnp.maximum(h1, 0.0)                       # [TM, 128]

    # fc2 + relu (128x128 MXU contraction; padded lanes stay exactly 0).
    h2 = jnp.dot(h1, w2, preferred_element_type=jnp.float32) + b2
    h2 = jnp.maximum(h2, 0.0)                       # [TM, 128]

    # out layer, computed lane-dense at 128 (real logits in lanes [0, NUM_ACTIONS)).
    logits = jnp.dot(h2, w3, preferred_element_type=jnp.float32) + b3

    # Mask padded lanes, then numerically-stable softmax over all 128 lanes;
    # masked lanes underflow to exp(...) == 0 and don't touch the denominator.
    lane = jax.lax.broadcasted_iota(jnp.int32, logits.shape, 1)
    logits = jnp.where(lane < NUM_ACTIONS, logits, jnp.float32(-1e30))
    m = jnp.max(logits, axis=-1, keepdims=True)
    e = jnp.exp(logits - m)
    denom = jnp.sum(e, axis=-1, keepdims=True)
    inv = pl.reciprocal(denom, approx=True)         # EUP vrcp (otherwise idle slot)
    inv = inv * (2.0 - denom * inv)                 # one Newton step -> ~f32 accurate
    probs = e * inv                                 # [TM, 128]

    # Store only the (padded) action lanes: 16x less HBM writeback than the
    # 128-lane slab at the cost of a masked store.
    o_ref[...] = probs[:, :o_ref.shape[1]]


def net_forward(x, packed_params, *, tm_max=2048, out_lanes=OUT_LANES):
    """x: [B, NUM_STATES] f32 -> [B, NUM_ACTIONS] f32 softmax probabilities."""
    B = x.shape[0]

    # Grid/tile selection:
    #  * enough steps to keep each tile <= tm_max (amortizes ~0.35us/step),
    #  * at least MIN_GRID_STEPS steps when B >= 16 (v7x 2-TC sharding),
    #  * TM rounded to 8 sublanes, so padding waste is at most a few rows.
    steps = max(_cdiv(B, tm_max), 1)
    steps = max(steps, min(MIN_GRID_STEPS, _cdiv(B, 8)))
    TM = _round_up(_cdiv(B, steps), 8)
    B_pad = steps * TM
    if B_pad != B:
        x = jnp.pad(x, ((0, B_pad - B), (0, 0)))

    out = pl.pallas_call(
        net_kernel,
        out_shape=jax.ShapeDtypeStruct((B_pad, out_lanes), jnp.float32),
        grid_spec=pltpu.PrefetchScalarGridSpec(
            num_scalar_prefetch=0,
            grid=(steps,),
            in_specs=[
                pl.BlockSpec((TM, NUM_STATES), lambda i: (i, 0)),
                # constant block index -> weights stay VMEM-resident across steps
                pl.BlockSpec((P_ROWS, P_LANES), lambda i: (0, 0)),
            ],
            out_specs=pl.BlockSpec((TM, out_lanes), lambda i: (i, 0)),
        ),
        compiler_params=pltpu.CompilerParams(
            # batch axis is embarrassingly parallel -> shards across v7x's 2 TCs
            dimension_semantics=("parallel",),
            # explicit, chip-portable budget (<= v7x scoped default, safe on v5e/v6e)
            vmem_limit_bytes=32 * 1024 * 1024,
        ),
    )(x, packed_params)

    # Trim batch padding and the padded action lanes.  Under jit with a real
    # consumer this slice fuses; it is only a standalone copy when returned.
    return out[:B, :NUM_ACTIONS]


def init_params(key):
    """Mirror the PyTorch module's init: weights ~ N(0, 0.1); biases ~ torch
    default U(-1/sqrt(fan_in), 1/sqrt(fan_in)). Weights stored as [in, out]."""
    ks = jax.random.split(key, 6)

    def w(k, fan_in, fan_out):
        return (0.1 * jax.random.normal(k, (fan_in, fan_out))).astype(jnp.float32)

    def b(k, fan_in, fan_out):
        bound = 1.0 / jnp.sqrt(float(fan_in))
        return jax.random.uniform(
            k, (1, fan_out), minval=-bound, maxval=bound
        ).astype(jnp.float32)

    w1 = w(ks[0], NUM_STATES, HID1)
    b1 = b(ks[1], NUM_STATES, HID1)
    w2 = w(ks[2], HID1, HID2)
    b2 = b(ks[3], HID1, HID2)
    w3 = w(ks[4], HID2, NUM_ACTIONS)
    b3 = b(ks[5], HID2, NUM_ACTIONS)
    return (w1, b1, w2, b2, w3, b3)


def net_forward_ref(x, params):
    """Pure-JAX reference for correctness checking."""
    w1, b1, w2, b2, w3, b3 = params
    h1 = jnp.maximum(x @ w1 + b1, 0.0)
    h2 = jnp.maximum(h1 @ w2 + b2, 0.0)
    logits = h2 @ w3 + b3
    return jax.nn.softmax(logits, axis=-1)


if __name__ == "__main__":
    key = jax.random.PRNGKey(0)
    pkey, xkey = jax.random.split(key)

    params = init_params(pkey)
    packed = pack_params(params)            # packed once, reused across calls

    # Small required run (single grid step).
    B = 8
    x = jax.random.normal(xkey, (B, NUM_STATES), dtype=jnp.float32)
    out = jax.block_until_ready(net_forward(x, packed))
    ref = net_forward_ref(x, params)
    assert out.shape == (B, NUM_ACTIONS)
    assert jnp.allclose(out, ref, atol=1e-5, rtol=1e-5), "mismatch vs reference (B=8)"
    assert jnp.allclose(jnp.sum(out, axis=-1), 1.0, atol=1e-5)

    # Larger batch: exercises the 2-step parallel grid + small batch padding (520 -> 528).
    B2 = 520
    x2 = jax.random.normal(jax.random.PRNGKey(1), (B2, NUM_STATES), dtype=jnp.float32)
    out2 = jax.block_until_ready(net_forward(x2, packed))
    ref2 = net_forward_ref(x2, params)
    assert out2.shape == (B2, NUM_ACTIONS)
    assert jnp.allclose(out2, ref2, atol=1e-5, rtol=1e-5), "mismatch vs reference (B=520)"
    assert jnp.allclose(jnp.sum(out2, axis=-1), 1.0, atol=1e-5)

    print("KERNEL_OK")
</pallas_src>

<mosaic_0001>
module attributes {stable_mosaic.version = 11 : i64} {
  func.func @net_kernel(%arg0: i32, %arg1: memref<8x4xf32, #tpu.memory_space<vmem>>, %arg2: memref<288x128xf32, #tpu.memory_space<vmem>>, %arg3: memref<8x8xf32, #tpu.memory_space<vmem>>) attributes {dimension_semantics = [#tpu.dimension_semantics<parallel>], iteration_bounds = array<i64: 1>, scalar_prefetch = 0 : i64, scratch_operands = 0 : i64, tpu.core_type = #tpu.core_type<tc>, window_params = [{transform_indices = @transform_0, window_bounds = array<i64: 8, 4>}, {pipeline_mode = #tpu.pipeline_mode<synchronous>, transform_indices = @transform_1, window_bounds = array<i64: 288, 128>}, {transform_indices = @transform_2, window_bounds = array<i64: 8, 8>}]} {
    %c0 = arith.constant 0 : index
    %c0_0 = arith.constant 0 : index
    %0 = vector.load %arg1[%c0, %c0_0] : memref<8x4xf32, #tpu.memory_space<vmem>>, vector<8x4xf32>
    %c0_1 = arith.constant 0 : index
    %c0_2 = arith.constant 0 : index
    %1 = vector.load %arg2[%c0_1, %c0_2] : memref<288x128xf32, #tpu.memory_space<vmem>>, vector<4x128xf32>
    %c8 = arith.constant 8 : index
    %c0_3 = arith.constant 0 : index
    %2 = vector.load %arg2[%c8, %c0_3] : memref<288x128xf32, #tpu.memory_space<vmem>>, vector<1x128xf32>
    %c16 = arith.constant 16 : index
    %c0_4 = arith.constant 0 : index
    %3 = vector.load %arg2[%c16, %c0_4] : memref<288x128xf32, #tpu.memory_space<vmem>>, vector<128x128xf32>
    %c144 = arith.constant 144 : index
    %c0_5 = arith.constant 0 : index
    %4 = vector.load %arg2[%c144, %c0_5] : memref<288x128xf32, #tpu.memory_space<vmem>>, vector<1x128xf32>
    %c152 = arith.constant 152 : index
    %c0_6 = arith.constant 0 : index
    %5 = vector.load %arg2[%c152, %c0_6] : memref<288x128xf32, #tpu.memory_space<vmem>>, vector<128x128xf32>
    %c280 = arith.constant 280 : index
    %c0_7 = arith.constant 0 : index
    %6 = vector.load %arg2[%c280, %c0_7] : memref<288x128xf32, #tpu.memory_space<vmem>>, vector<1x128xf32>
    %7 = vector.extract_strided_slice %0 {offsets = [0, 0], sizes = [8, 1], strides = [1, 1]} : vector<8x4xf32> to vector<8x1xf32>
    %8 = vector.extract_strided_slice %1 {offsets = [0, 0], sizes = [1, 128], strides = [1, 1]} : vector<4x128xf32> to vector<1x128xf32>
    %9 = vector.broadcast %7 : vector<8x1xf32> to vector<8x128xf32>
    %10 = vector.broadcast %8 : vector<1x128xf32> to vector<8x128xf32>
    %11 = arith.mulf %9, %10 : vector<8x128xf32>
    %12 = vector.broadcast %2 : vector<1x128xf32> to vector<8x128xf32>
    %13 = arith.addf %12, %11 : vector<8x128xf32>
    %14 = vector.extract_strided_slice %0 {offsets = [0, 1], sizes = [8, 1], strides = [1, 1]} : vector<8x4xf32> to vector<8x1xf32>
    %15 = vector.extract_strided_slice %1 {offsets = [1, 0], sizes = [1, 128], strides = [1, 1]} : vector<4x128xf32> to vector<1x128xf32>
    %16 = vector.broadcast %14 : vector<8x1xf32> to vector<8x128xf32>
    %17 = vector.broadcast %15 : vector<1x128xf32> to vector<8x128xf32>
    %18 = arith.mulf %16, %17 : vector<8x128xf32>
    %19 = arith.addf %13, %18 : vector<8x128xf32>
    %20 = vector.extract_strided_slice %0 {offsets = [0, 2], sizes = [8, 1], strides = [1, 1]} : vector<8x4xf32> to vector<8x1xf32>
    %21 = vector.extract_strided_slice %1 {offsets = [2, 0], sizes = [1, 128], strides = [1, 1]} : vector<4x128xf32> to vector<1x128xf32>
    %22 = vector.broadcast %20 : vector<8x1xf32> to vector<8x128xf32>
    %23 = vector.broadcast %21 : vector<1x128xf32> to vector<8x128xf32>
    %24 = arith.mulf %22, %23 : vector<8x128xf32>
    %25 = arith.addf %19, %24 : vector<8x128xf32>
    %26 = vector.extract_strided_slice %0 {offsets = [0, 3], sizes = [8, 1], strides = [1, 1]} : vector<8x4xf32> to vector<8x1xf32>
    %27 = vector.extract_strided_slice %1 {offsets = [3, 0], sizes = [1, 128], strides = [1, 1]} : vector<4x128xf32> to vector<1x128xf32>
    %28 = vector.broadcast %26 : vector<8x1xf32> to vector<8x128xf32>
    %29 = vector.broadcast %27 : vector<1x128xf32> to vector<8x128xf32>
    %30 = arith.mulf %28, %29 : vector<8x128xf32>
    %31 = arith.addf %25, %30 : vector<8x128xf32>
    %cst = arith.constant 0.000000e+00 : f32
    %32 = vector.broadcast %cst : f32 to vector<8x128xf32>
    %33 = arith.maximumf %31, %32 : vector<8x128xf32>
    %cst_8 = arith.constant dense<0.000000e+00> : vector<8x128xf32>
    %34 = tpu.matmul %33, %3, %cst_8 {dimension_numbers = #tpu.dot_dimension_numbers<[1], [0], [0], [1], [0, 0, 1, 1], [], []>} : vector<8x128xf32>, vector<128x128xf32>, vector<8x128xf32> -> vector<8x128xf32>
    %35 = vector.broadcast %4 : vector<1x128xf32> to vector<8x128xf32>
    %36 = arith.addf %34, %35 : vector<8x128xf32>
    %cst_9 = arith.constant 0.000000e+00 : f32
    %37 = vector.broadcast %cst_9 : f32 to vector<8x128xf32>
    %38 = arith.maximumf %36, %37 : vector<8x128xf32>
    %cst_10 = arith.constant dense<0.000000e+00> : vector<8x128xf32>
    %39 = tpu.matmul %38, %5, %cst_10 {dimension_numbers = #tpu.dot_dimension_numbers<[1], [0], [0], [1], [0, 0, 1, 1], [], []>} : vector<8x128xf32>, vector<128x128xf32>, vector<8x128xf32> -> vector<8x128xf32>
    %40 = vector.broadcast %6 : vector<1x128xf32> to vector<8x128xf32>
    %41 = arith.addf %39, %40 : vector<8x128xf32>
    %42 = tpu.iota {dimensions = array<i32: 1>} : vector<8x128xi32>
    %c2_i32 = arith.constant 2 : i32
    %43 = vector.broadcast %c2_i32 : i32 to vector<8x128xi32>
    %44 = arith.cmpi slt, %42, %43 : vector<8x128xi32>
    %cst_11 = arith.constant -1.000000e+30 : f32
    %45 = vector.broadcast %cst_11 : f32 to vector<8x128xf32>
    %46 = arith.select %44, %41, %45 : vector<8x128xi1>, vector<8x128xf32>
    %cst_12 = arith.constant dense<0xFF800000> : vector<8xf32>
    %47 = vector.multi_reduction <maximumf>, %46, %cst_12 [1] : vector<8x128xf32> to vector<8xf32>
    %48 = vector.shape_cast %47 : vector<8xf32> to vector<8x1xf32>
    %49 = vector.broadcast %48 : vector<8x1xf32> to vector<8x128xf32>
    %50 = arith.subf %46, %49 : vector<8x128xf32>
    %51 = math.exp %50 : vector<8x128xf32>
    %cst_13 = arith.constant dense<0.000000e+00> : vector<8xf32>
    %52 = vector.multi_reduction <add>, %51, %cst_13 [1] : vector<8x128xf32> to vector<8xf32>
    %53 = vector.shape_cast %52 : vector<8xf32> to vector<8x1xf32>
    %54 = tpu.reciprocal %53 {approx = true} : vector<8x1xf32> -> vector<8x1xf32>
    %55 = arith.mulf %53, %54 : vector<8x1xf32>
    %cst_14 = arith.constant 2.000000e+00 : f32
    %56 = vector.broadcast %cst_14 : f32 to vector<8x1xf32>
    %57 = arith.subf %56, %55 : vector<8x1xf32>
    %58 = arith.mulf %54, %57 : vector<8x1xf32>
    %59 = vector.broadcast %58 : vector<8x1xf32> to vector<8x128xf32>
    %60 = arith.mulf %51, %59 : vector<8x128xf32>
    %61 = vector.extract_strided_slice %60 {offsets = [0, 0], sizes = [8, 8], strides = [1, 1]} : vector<8x128xf32> to vector<8x8xf32>
    %c0_15 = arith.constant 0 : index
    %c0_16 = arith.constant 0 : index
    %62 = vector.load %arg3[%c0_15, %c0_16] : memref<8x8xf32, #tpu.memory_space<vmem>>, vector<8x8xf32>
    tpu.vector_store %arg3[%c0_15, %c0_16], %61 {strides = array<i32>} : memref<8x8xf32, #tpu.memory_space<vmem>>, vector<8x8xf32>,
    return
  }
  func.func @transform_0(%arg0: i32) -> (i32, i32) {
    %c0_i32 = arith.constant 0 : i32
    %c0_i32_0 = arith.constant 0 : i32
    return %arg0, %c0_i32 : i32, i32
  }
  func.func @transform_1(%arg0: i32) -> (i32, i32) {
    %c0_i32 = arith.constant 0 : i32
    %c0_i32_0 = arith.constant 0 : i32
    %c0_i32_1 = arith.constant 0 : i32
    return %c0_i32, %c0_i32_0 : i32, i32
  }
  func.func @transform_2(%arg0: i32) -> (i32, i32) {
    %c0_i32 = arith.constant 0 : i32
    %c0_i32_0 = arith.constant 0 : i32
    return %arg0, %c0_i32 : i32, i32
  }
}

</mosaic_0001>

<bundles_post_ra>
// kernel: tpu_custom_call.1
= control target key start
LH: loop header
LB: loop body
LE: loop exit
PB: predicated region body
PF: predicated region fallthrough
CT: control target
= control target key end

     0   :  { %7 = vsyncpa [#allocation3], 0  ;;  %s529_s0 = inlined_call_operand.vmem [shape: f32[8,4], index: 0, kind: input, shape index: {}]   ;;  %s530_s1 = inlined_call_operand.hbm [shape: f32[288,128], index: 1, kind: input, shape index: {}]   ;;  %s531_s2 = inlined_call_operand.hbm [shape: f32[8,8], index: 2, kind: output, shape index: {}]  }
   0x1   :  { %8 = vsyncpa [#allocation4], 0  ;;  %s461_s9 = smov [#allocation2]  }
   0x2   :  { %s16_s10 = sshll.u32 %s461_s9, 4  ;;  %s17_s10 = int_to_ptr.vmem [resolvable:$true] %s16_s10 }
   0x3   :  { %s425_s11 = scalar_lea.vmem %s17_s10, 4608  ;;  %p430_p1 = scmp.lt.s32.totalorder %s17_s10, %s17_s10 }
   0x4   :  { %p426_p0 = scmp.ne.s32.totalorder %s17_s10, %s425_s11  ;;  %p431_p2 = scmp.lt.s32.totalorder %s425_s11, %s425_s11 }
   0x6   :  { %p432_p3 = por %p431_p2, %p430_p1 }
   0x8   :  { %p433_p4 = pnand %p432_p3, %p426_p0 }
   0xa   :  { %436 = shalt.err (!%p433_p4)
}
   0xb   :  { %s462_s12 = smov 128   ;;  %s463_s13 = smov 8  }
   0xc   :  { %22 = dma.hbm_to_vmem [thread:$0]  %s530_s1, 4608, %s17_s10, [#allocation3], %s462_s12, %s462_s12, %s463_s13  }
   0xd   :  { %457 = dma.done.wait [#allocation3], 4608  }
   0xe   :  { %458 = vsyncadd [#allocation3], 4294962688  ;;  %v464_v0 = vmov 0   ;;  %v465_v1 = vmov 2   ;;  %v466_v2 = vmov 0.0   ;;  %v26_v3 = vld [vmem:[%s529_s0] sm:$0xff]  ;;  %v68_v35 = vlaneseq }
   0xf   :  { %408 = vset.pattern.permute.xlu0 %v464_v0  ;;  %410 = vset.pattern.permute.xlu1 %v465_v1  ;;  %v44_v4 = vld [vmem:[#allocation2 + $0x88] sm:$0xff]  ;;  %v43_v5 = vld [vmem:[#allocation2 + $0x80] sm:$0xff]  ;;  %v467_v6 = vmov 1   ;;  %v468_v7 = vmov 3   ;;  %v42_v8 = vld [vmem:[#allocation2 + $0x78] sm:$0xff]  ;;  %vm469_vm0 = vmmov 0  }
  0x10   :  { %328 = vmatprep.subr.mxu0 %v466_v2  ;;  %363 = vmatprep.subr.mxu1 %v466_v2  ;;  %v41_v9 = vld [vmem:[#allocation2 + $0x70] sm:$0xff]  ;;  %v40_v10 = vld [vmem:[#allocation2 + $0x68] sm:$0xff]  ;;  %v39_v11 = vld [vmem:[#allocation2 + $0x60] sm:$0xff]  ;;  %v69_v36 = vshrl.u32 %v68_v35, 7  ;;  %s470_s0 = smov [#allocation5]   ;;  %vm274_vm2 = vcmask 64512  }
  0x11   :  { %65 = vperm.xlu0 %408, %v26_v3   ;;  %89 = vperm.xlu1 %410, %v26_v3   ;;  %v61_v12 = vld [vmem:[#allocation2 + $0x110] sm:$0xff]  ;;  %v60_v13 = vld [vmem:[#allocation2 + $0x108] sm:$0xff]  ;;  %v38_v14 = vld [vmem:[#allocation2 + $0x58] sm:$0xff]  ;;  %s282_s1 = sshll.u32 %s470_s0, 4  ;;  %s283_s1 = int_to_ptr.vmem [resolvable:$true] %s282_s1 }
  0x12   :  { %329 = vmatpush3.msra.mxu0 %v44_v4  ;;  %360 = vmatprep.mubr.msk.f32.mxu0 %vm469_vm0, %v466_v2  ;;  %v59_v15 = vld [vmem:[#allocation2 + $0x100] sm:$0xff]  ;;  %v37_v16 = vld [vmem:[#allocation2 + $0x50] sm:$0xff]  ;;  %v58_v17 = vld [vmem:[#allocation2 + $0xf8] sm:$0xff]  ;;  %v70_v37 = vsub.s32 0, %v69_v36  ;;  %v84_v40 = vsub.s32 1, %v69_v36  ;;  %v94_v42 = vsub.s32 2, %v69_v36  ;;  %p442_p6 = scmp.lt.s32.totalorder %s283_s1, %s283_s1 }
  0x13   :  { %330 = vmatprep.subr.mxu0 %v466_v2  ;;  %395 = vmatprep.mubr.msk.f32.mxu1 %vm469_vm0, %v466_v2  ;;  %v36_v18 = vld [vmem:[#allocation2 + $0x48] sm:$0xff]  ;;  %v57_v19 = vld [vmem:[#allocation2 + $0xf0] sm:$0xff]  ;;  %v35_v20 = vld [vmem:[#allocation2 + $0x40] sm:$0xff]  ;;  %v104_v44 = vsub.s32 3, %v69_v36  ;;  %s437_s18 = scalar_lea.vmem %s283_s1, 128 }
  0x14   :  { %331 = vmatpush3.msra.mxu0 %v43_v5  ;;  %364 = vmatpush3.msra.mxu1 %v61_v12  ;;  %v56_v21 = vld [vmem:[#allocation2 + $0xe8] sm:$0xff]  ;;  %v34_v22 = vld [vmem:[#allocation2 + $0x38] sm:$0xff]  ;;  %v55_v23 = vld [vmem:[#allocation2 + $0xe0] sm:$0xff]  ;;  %v259_v5 = vand.u32 127, %v68_v35  ;;  %p438_p5 = scmp.ne.s32.totalorder %s283_s1, %s437_s18  ;;  %p443_p7 = scmp.lt.s32.totalorder %s437_s18, %s437_s18 }
  0x15   :  { %409 = vset.pattern.permute.xlu0 %v467_v6  ;;  %411 = vset.pattern.permute.xlu1 %v468_v7  ;;  %v33_v24 = vld [vmem:[#allocation2 + $0x30] sm:$0xff]  ;;  %v54_v25 = vld [vmem:[#allocation2 + $0xd8] sm:$0xff]  ;;  %v32_v26 = vld [vmem:[#allocation2 + $0x28] sm:$0xff] }
  0x16   :  { %79 = vperm.xlu0 %409, %v26_v3   ;;  %99 = vperm.xlu1 %411, %v26_v3   ;;  %v53_v27 = vld [vmem:[#allocation2 + $0xd0] sm:$0xff]  ;;  %v31_v28 = vld [vmem:[#allocation2 + $0x20] sm:$0xff]  ;;  %v52_v29 = vld [vmem:[#allocation2 + $0xc8] sm:$0xff]  ;;  %vm260_vm1 = vcmp.lt.s32.totalorder %v259_v5, 2  ;;  %p444_p8 = por %p443_p7, %p442_p6 }
  0x17   :  { %332 = vmatprep.subr.mxu0 %v466_v2  ;;  %365 = vmatprep.subr.mxu1 %v466_v2  ;;  %v30_v30 = vld [vmem:[#allocation2 + $0x18] sm:$0xff]  ;;  %v51_v31 = vld [vmem:[#allocation2 + $0xc0] sm:$0xff]  ;;  %v29_v32 = vld [vmem:[#allocation2 + $0x10] sm:$0xff] }
  0x18   :  { %333 = vmatpush3.msra.mxu0 %v42_v8  ;;  %366 = vmatpush3.msra.mxu1 %v60_v13  ;;  %v50_v33 = vld [vmem:[#allocation2 + $0xb8] sm:$0xff]  ;;  %v49_v34 = vld [vmem:[#allocation2 + $0xb0] sm:$0xff]  ;;  %v27_v38 = vld [vmem:[#allocation2] sm:$0xf]  ;;  %p445_p9 = pnand %p444_p8, %p438_p5 }
  0x19   :  { %334 = vmatprep.subr.mxu0 %v466_v2  ;;  %367 = vmatprep.subr.mxu1 %v466_v2  ;;  %v71_v39 = vrot.slane %v27_v38, %v70_v37  ;;  %v85_v46 = vrot.slane %v27_v38, %v84_v40  ;;  %v291_v47 = vld [vmem:[#allocation2 + $0x8] ss:$0 sm:$0xff]  ;;  %v95_v48 = vrot.slane %v27_v38, %v94_v42  ;;  %v47_v61 = vld [vmem:[#allocation2 + $0xa0] sm:$0xff]  ;;  %v46_v62 = vld [vmem:[#allocation2 + $0x98] sm:$0xff] }
  0x1a   :  { %335 = vmatpush3.msra.mxu0 %v41_v9  ;;  %412 = vset.pattern.permute.xlu0 %v468_v7  ;;  %v105_v49 = vrot.slane %v27_v38, %v104_v44  ;;  %v48_v60 = vld [vmem:[#allocation2 + $0xa8] sm:$0xff]  ;;  %v292_v63 = vld [vmem:[#allocation2 + $0x90] ss:$0 sm:$0xff]  ;;  %v293_v6 = vld [vmem:[#allocation2 + $0x118] ss:$0 sm:$0xff] }
  0x1b   :  { %336 = vmatprep.subr.mxu0 %v466_v2  ;;  %368 = vmatpush3.msra.mxu1 %v59_v15 }
  0x1c   :  { %337 = vmatpush3.msra.mxu0 %v40_v10  ;;  %369 = vmatprep.subr.mxu1 %v466_v2 }
  0x1d   :  { %338 = vmatprep.subr.mxu0 %v466_v2  ;;  %370 = vmatpush3.msra.mxu1 %v58_v17 }
  0x1e   :  { %339 = vmatpush3.msra.mxu0 %v39_v11  ;;  %371 = vmatprep.subr.mxu1 %v466_v2 }
  0x1f   :  { %340 = vmatprep.subr.mxu0 %v466_v2  ;;  %372 = vmatpush3.msra.mxu1 %v57_v19 }
  0x20   :  { %341 = vmatpush3.msra.mxu0 %v38_v14  ;;  %373 = vmatprep.subr.mxu1 %v466_v2 }
  0x21   :  { %342 = vmatprep.subr.mxu0 %v466_v2  ;;  %374 = vmatpush3.msra.mxu1 %v56_v21 }
  0x22   :  { %343 = vmatpush3.msra.mxu0 %v37_v16  ;;  %375 = vmatprep.subr.mxu1 %v466_v2 }
  0x23   :  { %344 = vmatprep.subr.mxu0 %v466_v2  ;;  %376 = vmatpush3.msra.mxu1 %v55_v23 }
  0x24   :  { %345 = vmatpush3.msra.mxu0 %v36_v18  ;;  %377 = vmatprep.subr.mxu1 %v466_v2 }
  0x25   :  { %346 = vmatprep.subr.mxu0 %v466_v2  ;;  %378 = vmatpush3.msra.mxu1 %v54_v25 }
  0x26   :  { %347 = vmatpush3.msra.mxu0 %v35_v20  ;;  %379 = vmatprep.subr.mxu1 %v466_v2 }
  0x27   :  { %348 = vmatprep.subr.mxu0 %v466_v2  ;;  %380 = vmatpush3.msra.mxu1 %v53_v27 }
  0x28   :  { %349 = vmatpush3.msra.mxu0 %v34_v22  ;;  %381 = vmatprep.subr.mxu1 %v466_v2 }
  0x29   :  { %350 = vmatprep.subr.mxu0 %v466_v2  ;;  %382 = vmatpush3.msra.mxu1 %v52_v29 }
  0x2a   :  { %351 = vmatpush3.msra.mxu0 %v33_v24  ;;  %383 = vmatprep.subr.mxu1 %v466_v2 }
  0x2b   :  { %352 = vmatprep.subr.mxu0 %v466_v2  ;;  %384 = vmatpush3.msra.mxu1 %v51_v31 }
  0x2c   :  { %353 = vmatpush3.msra.mxu0 %v32_v26  ;;  %385 = vmatprep.subr.mxu1 %v466_v2 }
  0x2d   :  { %354 = vmatprep.subr.mxu0 %v466_v2  ;;  %386 = vmatpush3.msra.mxu1 %v50_v33 }
  0x2e   :  { %355 = vmatpush3.msra.mxu0 %v31_v28  ;;  %387 = vmatprep.subr.mxu1 %v466_v2 }
  0x2f   :  { %356 = vmatprep.subr.mxu0 %v466_v2  ;;  %388 = vmatpush3.msra.mxu1 %v49_v34 }
  0x30   :  { %357 = vmatpush3.msra.mxu0 %v30_v30  ;;  %389 = vmatprep.subr.mxu1 %v466_v2 }
  0x31   :  { %358 = vmatprep.subr.mxu0 %v466_v2  ;;  %390 = vmatpush3.msra.mxu1 %v48_v60 }
  0x32   :  { %359 = vmatpush3.msra.mxu0 %v29_v32  ;;  %391 = vmatprep.subr.mxu1 %v466_v2 }
  0x33   :  { %392 = vmatpush3.msra.mxu1 %v47_v61 }
  0x34   :  { %393 = vmatprep.subr.mxu1 %v466_v2 }
  0x35   :  { %394 = vmatpush3.msra.mxu1 %v46_v62 }
  0x8c   :  { %v66_v41 = vpop.permute.xlu0 %65  ;;  %v90_v43 = vpop.permute.xlu1 %89 }
  0x8d   :  { %v72_v45 = vmul.f32 %v71_v39, %v66_v41  ;;  %v96_v54 = vmul.f32 %v95_v48, %v90_v43 }
  0x8f   :  { %v77_v52 = vadd.f32 %v291_v47, %v72_v45 }
  0x91   :  { %v80_v50 = vpop.permute.xlu0 %79  ;;  %v100_v51 = vpop.permute.xlu1 %99 }
  0x92   :  { %v86_v53 = vmul.f32 %v85_v46, %v80_v50  ;;  %v106_v56 = vmul.f32 %v105_v49, %v100_v51 }
  0x94   :  { %v87_v55 = vadd.f32 %v86_v53, %v77_v52 }
  0x96   :  { %v97_v57 = vadd.f32 %v96_v54, %v87_v55 }
  0x98   :  { %v107_v58 = vadd.f32 %v106_v56, %v97_v57 }
  0x9a   :  { %v108_v59 = vmax.f32 %v107_v58, 0.0 }
  0x9c   :  { %361 = vmatmul.mubr.f32.vlgmr.msra.gmra.mxu0 %v108_v59 }
 0x15c   :  { %v179_v0 = vpop.f32.mrf.mxu0 }
 0x15d   :  { %v180_v1 = vadd.f32 %v292_v63, %v179_v0 }
 0x15e   :  { %v362_v3 = vpop.f32.mrf.mxu0 }
 0x15f   :  { %v183_v4 = vmax.f32 %v180_v1, 0.0 }
 0x161   :  { %396 = vmatmul.mubr.f32.vlgmr.msra.gmra.mxu1 %v183_v4 }
 0x221   :  { %v254_v7 = vpop.f32.mrf.mxu1 }
 0x222   :  { %v255_v8 = vadd.f32 %v293_v6, %v254_v7 }
 0x223   :  { %v397_v9 = vpop.f32.mrf.mxu1 }
 0x224   :  { %v261_v10 = vsel %vm260_vm1, %v255_v8, -1e+30 }
 0x225   :  { %262 = vmax.xlane.f32.xlu1 %v261_v10 }
 0x2ae   :  { %v263_v11 = vpop.xlane.xlu1 %262 }
 0x2af   :  { %v264_v12 = vsub.f32 %v261_v10, %v263_v11 }
 0x2b1   :  { %v265_v13 = vmul.f32 1.442695, %v264_v12 }
 0x2b3   :  { %413 = vpow2.f32 %v265_v13 }
 0x2c0   :  { %v414_v2 = vpop.eup %413 }
 0x2c1   :  { %267 = vadd.xlane.f32.xlu0 %v414_v2 }
 0x34a   :  { %v268_v14 = vpop.xlane.xlu0 %267 }
 0x34b   :  { %415 = vrcp.f32 %v268_v14 }
 0x358   :  { %v416_v15 = vpop.eup %415 }
 0x359   :  { %v270_v16 = vmul.f32 %v416_v15, %v268_v14 }
 0x35b   :  { %v271_v17 = vsub.f32 2.0, %v270_v16 }
 0x35d   :  { %v272_v18 = vmul.f32 %v416_v15, %v271_v17 }
 0x35f   :  { %v273_v19 = vmul.f32 %v414_v2, %v272_v18 }
 0x361   :  { %275 = vst.msk [vmem:[#allocation5] sm:$0xff] %vm274_vm2, %v273_v19 }
 0x362   :  { %448 = shalt.err (!%p445_p9)
}
 0x363   :  { %285 = dma.vmem_to_hbm [thread:$0]  %s283_s1, 128, %s531_s2, [#allocation4]  }
 0x364   :  { %459 = dma.done.wait [#allocation4], 128  }
 0x365   :  { %460 = vsyncadd [#allocation4], 4294967168 }
 0x366   :  { %289 = vsyncpa [#allocation3], 1 }
 0x367   :  { %290 = vsyncpa [#allocation4], 1 }

</bundles_post_ra>
